<compile_context>
chip_gen: v6e
topology: v6e:2x2x1
jax: 0.10.0
libtpu: 0.0.40
codegen_flags: <defaults>
</compile_context>

<pallas_src>
import functools
import math

import jax
import jax.numpy as jnp
from jax.experimental import pallas as pl
from jax.experimental.pallas import tpu as pltpu


LANE = 128


# ------------------------------- small utils ------------------------------- #

def _round_up(v, m):
    return ((v + m - 1) // m) * m


def _pad2(a, rows, cols):
    return jnp.pad(a, ((0, rows - a.shape[0]), (0, cols - a.shape[1])))


def _pick_tile(n_p, cap, min_tiles=1):
    """Largest multiple-of-LANE divisor of n_p that is <= cap, preferring to
    leave at least `min_tiles` grid steps along that axis (so a "parallel"
    grid axis can still be split across both TensorCores on megacore parts)."""
    if min_tiles > 1:
        cap = min(cap, n_p // min_tiles)
    cap = max(LANE, min(cap, n_p))
    best = LANE
    t = LANE
    while t <= cap:
        if n_p % t == 0:
            best = t
        t += LANE
    return best


def _vmem_limit(blocks):
    """Conservative VMEM budget: every listed block counted double-buffered plus
    25% headroom, clamped to [32 MiB, 64 MiB] (64 MiB = v7x physical VMEM)."""
    est = sum(2 * math.prod(shape) * jnp.dtype(dtype).itemsize
              for shape, dtype in blocks)
    return int(min(64 << 20, max(32 << 20, (est * 5) // 4)))


# ----------------------------- Pallas kernels ------------------------------ #

def _mlp_fused_kernel(x_ref, *refs, n_enc, n_dec, emit_bf16):
    """Fused MLP chain on one row tile.

    refs = (enc_w0, enc_b0, ..., dec_w0, dec_b0, ..., *out_refs)
    out_refs = (encode_f32[, encode_bf16][, decode_f32])
    Weights are pre-transposed [Din, Dout] bf16; biases are [1, Dout] f32.
    ReLU after every Linear except the last of each (encoder / decoder) chain.
    """
    nw = 2 * (n_enc + n_dec)
    wb = refs[:nw]
    outs = refs[nw:]

    h = x_ref[...]
    for i in range(n_enc):
        w = wb[2 * i][...]
        b = wb[2 * i + 1][...]
        h = jnp.dot(h.astype(jnp.bfloat16), w,
                    preferred_element_type=jnp.float32) + b
        if i < n_enc - 1:
            h = jnp.maximum(h, 0.0)

    oi = 0
    outs[oi][...] = h.astype(outs[oi].dtype)          # encode (f32, user-facing)
    oi += 1
    if emit_bf16:
        outs[oi][...] = h.astype(jnp.bfloat16)        # encode (bf16, downstream)
        oi += 1

    if n_dec:
        g = h
        for i in range(n_dec):
            w = wb[2 * (n_enc + i)][...]
            b = wb[2 * (n_enc + i) + 1][...]
            g = jnp.dot(g.astype(jnp.bfloat16), w,
                        preferred_element_type=jnp.float32) + b
            if i < n_dec - 1:
                g = jnp.maximum(g, 0.0)
        outs[oi][...] = g.astype(outs[oi].dtype)      # decode (f32)


def _selfexpr_decoder_kernel(coeff_ref, encode_ref, *refs, n_dec, block_k):
    """latent += coeff_tile @ encode[k*block_k : (k+1)*block_k]  (f32 acc in the
    VMEM-resident latent output block), with the full decoder MLP applied
    in-place on the last reduction step.

    encode_ref covers the WHOLE (n_p, d_lat_p) bf16 matrix (constant index map
    -> streamed from HBM once, resident in VMEM across the entire grid)."""
    latent_ref = refs[-2]
    decode_ref = refs[-1]
    wb = refs[:-2]
    k = pl.program_id(1)

    @pl.when(k == 0)
    def _():
        latent_ref[...] = jnp.zeros_like(latent_ref)

    k0 = pl.multiple_of(k * block_k, block_k)
    enc_tile = encode_ref[pl.ds(k0, block_k), :]       # bf16, already in VMEM
    latent_ref[...] += jnp.dot(coeff_ref[...], enc_tile,
                               preferred_element_type=jnp.float32)

    @pl.when(k == pl.num_programs(1) - 1)
    def _():
        h = latent_ref[...]
        for i in range(n_dec):
            w = wb[2 * i][...]
            b = wb[2 * i + 1][...]
            h = jnp.dot(h.astype(jnp.bfloat16), w,
                        preferred_element_type=jnp.float32) + b
            if i < n_dec - 1:
                h = jnp.maximum(h, 0.0)
        decode_ref[...] = h.astype(decode_ref.dtype)


# --------------------------- pallas_call wrappers --------------------------- #

def _run_mlp(x_p, enc_prep, dec_prep, block_rows, emit_bf16):
    """One fused pallas_call over row tiles: encoder (and optionally decoder)."""
    n_p, d_in = x_p.shape
    n_enc = len(enc_prep)
    n_dec = len(dec_prep) if dec_prep else 0
    d_lat_p = enc_prep[-1][0].shape[1]
    layer_list = list(enc_prep) + (list(dec_prep) if dec_prep else [])

    in_specs = [pl.BlockSpec((block_rows, d_in), lambda i: (i, 0))]
    args = [x_p]
    for w, b in layer_list:
        in_specs.append(pl.BlockSpec(w.shape, lambda i: (0, 0)))
        in_specs.append(pl.BlockSpec(b.shape, lambda i: (0, 0)))
        args += [w, b]

    out_shapes = [jax.ShapeDtypeStruct((n_p, d_lat_p), jnp.float32)]
    out_specs = [pl.BlockSpec((block_rows, d_lat_p), lambda i: (i, 0))]
    vmem_blocks = [((block_rows, d_in), x_p.dtype),
                   ((block_rows, d_lat_p), jnp.float32)]
    vmem_blocks += [(w.shape, w.dtype) for w, b in layer_list]
    vmem_blocks += [(b.shape, b.dtype) for w, b in layer_list]
    if emit_bf16:
        out_shapes.append(jax.ShapeDtypeStruct((n_p, d_lat_p), jnp.bfloat16))
        out_specs.append(pl.BlockSpec((block_rows, d_lat_p), lambda i: (i, 0)))
        vmem_blocks.append(((block_rows, d_lat_p), jnp.bfloat16))
    if n_dec:
        d_dec_p = dec_prep[-1][0].shape[1]
        out_shapes.append(jax.ShapeDtypeStruct((n_p, d_dec_p), jnp.float32))
        out_specs.append(pl.BlockSpec((block_rows, d_dec_p), lambda i: (i, 0)))
        vmem_blocks.append(((block_rows, d_dec_p), jnp.float32))

    return pl.pallas_call(
        functools.partial(_mlp_fused_kernel, n_enc=n_enc, n_dec=n_dec,
                          emit_bf16=emit_bf16),
        out_shape=tuple(out_shapes),
        grid_spec=pltpu.PrefetchScalarGridSpec(
            num_scalar_prefetch=0,
            grid=(n_p // block_rows,),
            in_specs=in_specs,
            out_specs=out_specs),
        compiler_params=pltpu.CompilerParams(
            dimension_semantics=("parallel",),
            vmem_limit_bytes=_vmem_limit(vmem_blocks)),
    )(*args)


def _run_selfexpr_decoder(coeff_p, encode_bf16, dec_prep, block_m, block_k):
    n_p = coeff_p.shape[0]
    d_lat_p = encode_bf16.shape[1]
    d_dec_p = dec_prep[-1][0].shape[1]
    n_dec = len(dec_prep)

    in_specs = [
        pl.BlockSpec((block_m, block_k), lambda i, k: (i, k)),  # coeff stream
        pl.BlockSpec((n_p, d_lat_p), lambda i, k: (0, 0)),      # encode resident
    ]
    args = [coeff_p, encode_bf16]
    vmem_blocks = [((block_m, block_k), coeff_p.dtype),
                   ((n_p, d_lat_p), encode_bf16.dtype),
                   ((block_m, d_lat_p), jnp.float32),
                   ((block_m, d_dec_p), jnp.float32)]
    for w, b in dec_prep:
        in_specs.append(pl.BlockSpec(w.shape, lambda i, k: (0, 0)))
        in_specs.append(pl.BlockSpec(b.shape, lambda i, k: (0, 0)))
        args += [w, b]
        vmem_blocks += [(w.shape, w.dtype), (b.shape, b.dtype)]

    return pl.pallas_call(
        functools.partial(_selfexpr_decoder_kernel, n_dec=n_dec,
                          block_k=block_k),
        out_shape=(jax.ShapeDtypeStruct((n_p, d_lat_p), jnp.float32),
                   jax.ShapeDtypeStruct((n_p, d_dec_p), jnp.float32)),
        grid_spec=pltpu.PrefetchScalarGridSpec(
            num_scalar_prefetch=0,
            grid=(n_p // block_m, n_p // block_k),
            in_specs=in_specs,
            out_specs=[pl.BlockSpec((block_m, d_lat_p), lambda i, k: (i, 0)),
                       pl.BlockSpec((block_m, d_dec_p), lambda i, k: (i, 0))]),
        compiler_params=pltpu.CompilerParams(
            dimension_semantics=("parallel", "arbitrary"),
            vmem_limit_bytes=_vmem_limit(vmem_blocks)),
    )(*args)


# ------------------------- parameter initialization ------------------------ #

def _xavier_normal(key, shape):
    fan_out, fan_in = shape
    std = (2.0 / (fan_in + fan_out)) ** 0.5
    return std * jax.random.normal(key, shape, dtype=jnp.float32)


def _linear_init(key, d_in, d_out):
    # PyTorch nn.Linear default init: U(-1/sqrt(fan_in), 1/sqrt(fan_in))
    kw, kb = jax.random.split(key)
    bound = 1.0 / (d_in ** 0.5)
    w = jax.random.uniform(kw, (d_out, d_in), jnp.float32, -bound, bound)
    b = jax.random.uniform(kb, (d_out,), jnp.float32, -bound, bound)
    return w, b


def init_params(key, n_sample, k, layers):
    num_lay = len(layers)
    keys = jax.random.split(key, 2 + 2 * (num_lay - 1))
    params = {
        "coeff": _xavier_normal(keys[0], (n_sample, n_sample)),
        "coeff_cluster": _xavier_normal(keys[1], (k, n_sample)),
        "encoder": [],
        "decoder": [],
    }
    ki = 2
    for i in range(num_lay - 1):                      # encoder Linears
        params["encoder"].append(_linear_init(keys[ki], layers[i], layers[i + 1]))
        ki += 1
    for i in range(1, num_lay):                       # decoder Linears
        params["decoder"].append(_linear_init(keys[ki], layers[-i], layers[-i - 1]))
        ki += 1
    return params


def _prepare_linears(layer_params, pad_first_in=True):
    """Transpose W -> [Din, Dout], zero-pad feature dims to 128-multiples, cast
    to bf16; pad bias to f32 [1, Dout_p].  With pad_first_in=False the input
    feature dim of the FIRST layer keeps its true width (a full-dim block is
    legal and avoids wasting MXU K on zeros).  Done once per forward call."""
    dims = [layer_params[0][0].shape[1]] + [w.shape[0] for w, _ in layer_params]
    dims_p = [_round_up(d, LANE) for d in dims]
    if not pad_first_in:
        dims_p[0] = dims[0]
    prepared = []
    for idx, (w, b) in enumerate(layer_params):
        d_in_p, d_out_p = dims_p[idx], dims_p[idx + 1]
        w_t = _pad2(w.T, d_in_p, d_out_p).astype(jnp.bfloat16)
        b_p = _pad2(b.reshape(1, -1).astype(jnp.float32), 1, d_out_p)
        prepared.append((w_t, b_p))
    return prepared, dims, dims_p


# ------------------------------- forward pass ------------------------------ #

def autoencoder_forward(params, x, c_state=True, c_cluster_state=False,
                        block_rows=None, block_m=None, block_k=None):
    """Pallas forward of AutoEncoder.forward (norm=False).

    Tile sizes default to an adaptive choice: row tiles up to 512 (>= 2 tiles
    kept when possible for megacore), coeff reduction tile up to 1024.
    """
    n = x.shape[0]
    n_p = _round_up(n, LANE)

    enc_prep, enc_dims, enc_dims_p = _prepare_linears(params["encoder"],
                                                      pad_first_in=False)
    dec_prep, dec_dims, dec_dims_p = _prepare_linears(params["decoder"],
                                                      pad_first_in=True)

    d_lat, d_lat_p = enc_dims[-1], enc_dims_p[-1]
    d_out, d_out_p = dec_dims[-1], dec_dims_p[-1]

    if block_rows is None:
        block_rows = _pick_tile(n_p, 512, min_tiles=2)
    if block_m is None:
        block_m = _pick_tile(n_p, 512, min_tiles=2)
    if block_k is None:
        block_k = _pick_tile(n_p, 1024, min_tiles=1)

    # Rows zero-padded to n_p; feature dim kept at its true width (full-dim
    # block is legal).  bf16 halves x HBM traffic.  NOTE: padded ROWS of the
    # encoder output are NOT zero (bias propagates) — padded coeff COLUMNS are
    # zero and every result is row-sliced, so this never contaminates outputs.
    x_p = _pad2(x.astype(jnp.float32), n_p, enc_dims_p[0]).astype(jnp.bfloat16)

    if not c_state:
        # Fused encoder+decoder in ONE pallas_call: encode never touches HBM
        # between the two MLPs.
        encode_p, decode_p = _run_mlp(x_p, enc_prep, dec_prep,
                                      block_rows, emit_bf16=False)
        return {"encode": encode_p[:n, :d_lat], "decode": decode_p[:n, :d_out]}

    # Encoder emits f32 (user-facing) + bf16 (downstream matmul operand) so the
    # self-expression kernel reads bf16 straight from HBM with no per-step cast.
    encode_f32_p, encode_bf16_p = _run_mlp(x_p, enc_prep, None,
                                           block_rows, emit_bf16=True)
    encode = encode_f32_p[:n, :d_lat]

    coeff = params["coeff"]
    coeff_p = _pad2(coeff, n_p, n_p).astype(jnp.bfloat16)   # bf16 coeff stream
    latent_p, decode_p = _run_selfexpr_decoder(coeff_p, encode_bf16_p, dec_prep,
                                               block_m, block_k)
    out = {
        "encode": encode,
        "latent_c": latent_p[:n, :d_lat],
        "C1": coeff,
        "decode": decode_p[:n, :d_out],
    }
    if c_cluster_state:
        # Tiny (k x N) GEMM: a standalone Pallas call underfills the MXU and
        # pays per-step grid overhead, so plain XLA dot is used instead.
        out["latent_cluster"] = jnp.dot(params["coeff_cluster"], encode,
                                        preferred_element_type=jnp.float32)
        out["C2"] = params["coeff_cluster"]
        # TODO(synk): MiniBatchKMeans fit_predict / cluster_centers_ /
        # cluster_label (stateful sklearn) have no Pallas equivalent; only the
        # latent_cluster matmul is computed here.
    return out


# --------------------------- pure-JAX reference ----------------------------- #

def _ref_forward(params, x):
    ne, nd = len(params["encoder"]), len(params["decoder"])
    h = x
    for i, (w, b) in enumerate(params["encoder"]):
        h = h @ w.T + b
        if i < ne - 1:
            h = jnp.maximum(h, 0.0)
    encode = h
    latent_c = params["coeff"] @ encode

    def run_dec(z):
        for i, (w, b) in enumerate(params["decoder"]):
            z = z @ w.T + b
            if i < nd - 1:
                z = jnp.maximum(z, 0.0)
        return z

    return {"encode": encode, "latent_c": latent_c,
            "decode": run_dec(latent_c), "decode_nc": run_dec(encode),
            "latent_cluster": params["coeff_cluster"] @ encode}


# ----------------------------------- main ----------------------------------- #

if __name__ == "__main__":
    n_sample, k_clusters = 256, 8
    layers = (64, 32, 16)

    key = jax.random.PRNGKey(0)
    kparam, kx = jax.random.split(key)
    params = init_params(kparam, n_sample, k_clusters, layers)
    x = jax.random.normal(kx, (n_sample, layers[0]), dtype=jnp.float32)

    fwd = jax.jit(functools.partial(autoencoder_forward,
                                    c_state=True, c_cluster_state=True))
    out = fwd(params, x)
    out = jax.tree_util.tree_map(jax.block_until_ready, out)

    fwd_nc = jax.jit(functools.partial(autoencoder_forward, c_state=False))
    out_nc = fwd_nc(params, x)
    out_nc = jax.tree_util.tree_map(jax.block_until_ready, out_nc)

    ref = _ref_forward(params, x)
    tol = dict(atol=2e-2, rtol=2e-2)   # bf16 matmul operands, f32 accumulation
    assert out["encode"].shape == (n_sample, layers[-1])
    assert out["latent_c"].shape == (n_sample, layers[-1])
    assert out["decode"].shape == (n_sample, layers[0])
    assert out["latent_cluster"].shape == (k_clusters, layers[-1])
    assert out_nc["encode"].shape == (n_sample, layers[-1])
    assert out_nc["decode"].shape == (n_sample, layers[0])
    assert jnp.allclose(out["encode"], ref["encode"], **tol), "encode"
    assert jnp.allclose(out["latent_c"], ref["latent_c"], **tol), "latent_c"
    assert jnp.allclose(out["decode"], ref["decode"], **tol), "decode"
    assert jnp.allclose(out["latent_cluster"], ref["latent_cluster"], **tol), \
        "latent_cluster"
    assert jnp.allclose(out_nc["encode"], ref["encode"], **tol), "encode_nc"
    assert jnp.allclose(out_nc["decode"], ref["decode_nc"], **tol), "decode_nc"

    print("KERNEL_OK")
</pallas_src>

<mosaic_0001>
module attributes {stable_mosaic.version = 11 : i64} {
  func.func @_mlp_fused_kernel(%arg0: i32, %arg1: memref<128x64xbf16, #tpu.memory_space<vmem>>, %arg2: memref<64x128xbf16, #tpu.memory_space<vmem>>, %arg3: memref<1x128xf32, #tpu.memory_space<vmem>>, %arg4: memref<128x128xbf16, #tpu.memory_space<vmem>>, %arg5: memref<1x128xf32, #tpu.memory_space<vmem>>, %arg6: memref<128x128xf32, #tpu.memory_space<vmem>>, %arg7: memref<128x128xbf16, #tpu.memory_space<vmem>>) attributes {dimension_semantics = [#tpu.dimension_semantics<parallel>], iteration_bounds = array<i64: 2>, scalar_prefetch = 0 : i64, scratch_operands = 0 : i64, tpu.core_type = #tpu.core_type<tc>, window_params = [{transform_indices = @transform_0, window_bounds = array<i64: 128, 64>}, {pipeline_mode = #tpu.pipeline_mode<synchronous>, transform_indices = @transform_1, window_bounds = array<i64: 64, 128>}, {pipeline_mode = #tpu.pipeline_mode<synchronous>, transform_indices = @transform_2, window_bounds = array<i64: 1, 128>}, {pipeline_mode = #tpu.pipeline_mode<synchronous>, transform_indices = @transform_3, window_bounds = array<i64: 128, 128>}, {pipeline_mode = #tpu.pipeline_mode<synchronous>, transform_indices = @transform_4, window_bounds = array<i64: 1, 128>}, {transform_indices = @transform_5, window_bounds = array<i64: 128, 128>}, {transform_indices = @transform_6, window_bounds = array<i64: 128, 128>}]} {
    %c0 = arith.constant 0 : index
    %c0_0 = arith.constant 0 : index
    %0 = vector.load %arg1[%c0, %c0_0] : memref<128x64xbf16, #tpu.memory_space<vmem>>, vector<128x64xbf16>
    %c0_1 = arith.constant 0 : index
    %c0_2 = arith.constant 0 : index
    %1 = vector.load %arg2[%c0_1, %c0_2] : memref<64x128xbf16, #tpu.memory_space<vmem>>, vector<64x128xbf16>
    %c0_3 = arith.constant 0 : index
    %c0_4 = arith.constant 0 : index
    %2 = vector.load %arg3[%c0_3, %c0_4] : memref<1x128xf32, #tpu.memory_space<vmem>>, vector<1x128xf32>
    %cst = arith.constant dense<0.000000e+00> : vector<128x128xf32>
    %3 = tpu.matmul %0, %1, %cst {dimension_numbers = #tpu.dot_dimension_numbers<[1], [0], [0], [1], [0, 0, 1, 1], [], []>} : vector<128x64xbf16>, vector<64x128xbf16>, vector<128x128xf32> -> vector<128x128xf32>
    %4 = vector.broadcast %2 : vector<1x128xf32> to vector<128x128xf32>
    %5 = arith.addf %3, %4 : vector<128x128xf32>
    %cst_5 = arith.constant 0.000000e+00 : f32
    %6 = vector.broadcast %cst_5 : f32 to vector<128x128xf32>
    %7 = arith.maximumf %5, %6 : vector<128x128xf32>
    %c0_6 = arith.constant 0 : index
    %c0_7 = arith.constant 0 : index
    %8 = vector.load %arg4[%c0_6, %c0_7] : memref<128x128xbf16, #tpu.memory_space<vmem>>, vector<128x128xbf16>
    %c0_8 = arith.constant 0 : index
    %c0_9 = arith.constant 0 : index
    %9 = vector.load %arg5[%c0_8, %c0_9] : memref<1x128xf32, #tpu.memory_space<vmem>>, vector<1x128xf32>
    %10 = arith.truncf %7 : vector<128x128xf32> to vector<128x128xbf16>
    %cst_10 = arith.constant dense<0.000000e+00> : vector<128x128xf32>
    %11 = tpu.matmul %10, %8, %cst_10 {dimension_numbers = #tpu.dot_dimension_numbers<[1], [0], [0], [1], [0, 0, 1, 1], [], []>} : vector<128x128xbf16>, vector<128x128xbf16>, vector<128x128xf32> -> vector<128x128xf32>
    %12 = vector.broadcast %9 : vector<1x128xf32> to vector<128x128xf32>
    %13 = arith.addf %11, %12 : vector<128x128xf32>
    %c0_11 = arith.constant 0 : index
    %c0_12 = arith.constant 0 : index
    %14 = vector.load %arg6[%c0_11, %c0_12] : memref<128x128xf32, #tpu.memory_space<vmem>>, vector<128x128xf32>
    tpu.vector_store %arg6[%c0_11, %c0_12], %13 {strides = array<i32>} : memref<128x128xf32, #tpu.memory_space<vmem>>, vector<128x128xf32>,
    %15 = arith.truncf %13 : vector<128x128xf32> to vector<128x128xbf16>
    %c0_13 = arith.constant 0 : index
    %c0_14 = arith.constant 0 : index
    %16 = vector.load %arg7[%c0_13, %c0_14] : memref<128x128xbf16, #tpu.memory_space<vmem>>, vector<128x128xbf16>
    tpu.vector_store %arg7[%c0_13, %c0_14], %15 {strides = array<i32>} : memref<128x128xbf16, #tpu.memory_space<vmem>>, vector<128x128xbf16>,
    return
  }
  func.func @transform_0(%arg0: i32) -> (i32, i32) {
    %c0_i32 = arith.constant 0 : i32
    %c0_i32_0 = arith.constant 0 : i32
    return %arg0, %c0_i32 : i32, i32
  }
  func.func @transform_1(%arg0: i32) -> (i32, i32) {
    %c0_i32 = arith.constant 0 : i32
    %c0_i32_0 = arith.constant 0 : i32
    %c0_i32_1 = arith.constant 0 : i32
    return %c0_i32, %c0_i32_0 : i32, i32
  }
  func.func @transform_2(%arg0: i32) -> (i32, i32) {
    %c0_i32 = arith.constant 0 : i32
    %c0_i32_0 = arith.constant 0 : i32
    %c0_i32_1 = arith.constant 0 : i32
    return %c0_i32, %c0_i32_0 : i32, i32
  }
  func.func @transform_3(%arg0: i32) -> (i32, i32) {
    %c0_i32 = arith.constant 0 : i32
    %c0_i32_0 = arith.constant 0 : i32
    %c0_i32_1 = arith.constant 0 : i32
    return %c0_i32, %c0_i32_0 : i32, i32
  }
  func.func @transform_4(%arg0: i32) -> (i32, i32) {
    %c0_i32 = arith.constant 0 : i32
    %c0_i32_0 = arith.constant 0 : i32
    %c0_i32_1 = arith.constant 0 : i32
    return %c0_i32, %c0_i32_0 : i32, i32
  }
  func.func @transform_5(%arg0: i32) -> (i32, i32) {
    %c0_i32 = arith.constant 0 : i32
    %c0_i32_0 = arith.constant 0 : i32
    return %arg0, %c0_i32 : i32, i32
  }
  func.func @transform_6(%arg0: i32) -> (i32, i32) {
    %c0_i32 = arith.constant 0 : i32
    %c0_i32_0 = arith.constant 0 : i32
    return %arg0, %c0_i32 : i32, i32
  }
}

module attributes {stable_mosaic.version = 11 : i64} {
  func.func @_selfexpr_decoder_kernel(%arg0: i32, %arg1: i32, %arg2: memref<128x256xbf16, #tpu.memory_space<vmem>>, %arg3: memref<256x128xbf16, #tpu.memory_space<vmem>>, %arg4: memref<128x128xbf16, #tpu.memory_space<vmem>>, %arg5: memref<1x128xf32, #tpu.memory_space<vmem>>, %arg6: memref<128x128xbf16, #tpu.memory_space<vmem>>, %arg7: memref<1x128xf32, #tpu.memory_space<vmem>>, %arg8: memref<128x128xf32, #tpu.memory_space<vmem>>, %arg9: memref<128x128xf32, #tpu.memory_space<vmem>>) attributes {dimension_semantics = [#tpu.dimension_semantics<parallel>, #tpu.dimension_semantics<arbitrary>], iteration_bounds = array<i64: 2, 1>, scalar_prefetch = 0 : i64, scratch_operands = 0 : i64, tpu.core_type = #tpu.core_type<tc>, window_params = [{transform_indices = @transform_0, window_bounds = array<i64: 128, 256>}, {pipeline_mode = #tpu.pipeline_mode<synchronous>, transform_indices = @transform_1, window_bounds = array<i64: 256, 128>}, {pipeline_mode = #tpu.pipeline_mode<synchronous>, transform_indices = @transform_2, window_bounds = array<i64: 128, 128>}, {pipeline_mode = #tpu.pipeline_mode<synchronous>, transform_indices = @transform_3, window_bounds = array<i64: 1, 128>}, {pipeline_mode = #tpu.pipeline_mode<synchronous>, transform_indices = @transform_4, window_bounds = array<i64: 128, 128>}, {pipeline_mode = #tpu.pipeline_mode<synchronous>, transform_indices = @transform_5, window_bounds = array<i64: 1, 128>}, {transform_indices = @transform_6, window_bounds = array<i64: 128, 128>}, {transform_indices = @transform_7, window_bounds = array<i64: 128, 128>}]} {
    %c0_i32 = arith.constant 0 : i32
    %0 = arith.cmpi eq, %arg1, %c0_i32 : i32
    %1 = arith.extui %0 : i1 to i32
    %c0_i32_0 = arith.constant 0 : i32
    %2 = arith.cmpi ne, %1, %c0_i32_0 : i32
    scf.if %2 {
      %cst_9 = arith.constant 0.000000e+00 : f32
      %15 = vector.broadcast %cst_9 : f32 to vector<128x128xf32>
      %c0_10 = arith.constant 0 : index
      %c0_11 = arith.constant 0 : index
      %16 = vector.load %arg8[%c0_10, %c0_11] : memref<128x128xf32, #tpu.memory_space<vmem>>, vector<128x128xf32>
      tpu.vector_store %arg8[%c0_10, %c0_11], %15 {strides = array<i32>} : memref<128x128xf32, #tpu.memory_space<vmem>>, vector<128x128xf32>,
    } else {
    }
    %c256_i32 = arith.constant 256 : i32
    %3 = arith.muli %arg1, %c256_i32 : i32
    %4 = tpu.assume_multiple %3, 256 : i32
    %5 = arith.index_cast %4 : i32 to index
    %c0 = arith.constant 0 : index
    %6 = vector.load %arg3[%5, %c0] : memref<256x128xbf16, #tpu.memory_space<vmem>>, vector<256x128xbf16>
    %c0_1 = arith.constant 0 : index
    %c0_2 = arith.constant 0 : index
    %7 = vector.load %arg8[%c0_1, %c0_2] : memref<128x128xf32, #tpu.memory_space<vmem>>, vector<128x128xf32>
    %c0_3 = arith.constant 0 : index
    %c0_4 = arith.constant 0 : index
    %8 = vector.load %arg2[%c0_3, %c0_4] : memref<128x256xbf16, #tpu.memory_space<vmem>>, vector<128x256xbf16>
    %cst = arith.constant dense<0.000000e+00> : vector<128x128xf32>
    %9 = tpu.matmul %8, %6, %cst {dimension_numbers = #tpu.dot_dimension_numbers<[1], [0], [0], [1], [0, 0, 1, 1], [], []>} : vector<128x256xbf16>, vector<256x128xbf16>, vector<128x128xf32> -> vector<128x128xf32>
    %10 = arith.addf %7, %9 : vector<128x128xf32>
    %c0_5 = arith.constant 0 : index
    %c0_6 = arith.constant 0 : index
    %11 = vector.load %arg8[%c0_5, %c0_6] : memref<128x128xf32, #tpu.memory_space<vmem>>, vector<128x128xf32>
    tpu.vector_store %arg8[%c0_5, %c0_6], %10 {strides = array<i32>} : memref<128x128xf32, #tpu.memory_space<vmem>>, vector<128x128xf32>,
    %c0_i32_7 = arith.constant 0 : i32
    %12 = arith.cmpi eq, %arg1, %c0_i32_7 : i32
    %13 = arith.extui %12 : i1 to i32
    %c0_i32_8 = arith.constant 0 : i32
    %14 = arith.cmpi ne, %13, %c0_i32_8 : i32
    scf.if %14 {
      %c0_9 = arith.constant 0 : index
      %c0_10 = arith.constant 0 : index
      %15 = vector.load %arg8[%c0_9, %c0_10] : memref<128x128xf32, #tpu.memory_space<vmem>>, vector<128x128xf32>
      %c0_11 = arith.constant 0 : index
      %c0_12 = arith.constant 0 : index
      %16 = vector.load %arg4[%c0_11, %c0_12] : memref<128x128xbf16, #tpu.memory_space<vmem>>, vector<128x128xbf16>
      %c0_13 = arith.constant 0 : index
      %c0_14 = arith.constant 0 : index
      %17 = vector.load %arg5[%c0_13, %c0_14] : memref<1x128xf32, #tpu.memory_space<vmem>>, vector<1x128xf32>
      %18 = arith.truncf %15 : vector<128x128xf32> to vector<128x128xbf16>
      %cst_15 = arith.constant dense<0.000000e+00> : vector<128x128xf32>
      %19 = tpu.matmul %18, %16, %cst_15 {dimension_numbers = #tpu.dot_dimension_numbers<[1], [0], [0], [1], [0, 0, 1, 1], [], []>} : vector<128x128xbf16>, vector<128x128xbf16>, vector<128x128xf32> -> vector<128x128xf32>
      %20 = vector.broadcast %17 : vector<1x128xf32> to vector<128x128xf32>
      %21 = arith.addf %19, %20 : vector<128x128xf32>
      %cst_16 = arith.constant 0.000000e+00 : f32
      %22 = vector.broadcast %cst_16 : f32 to vector<128x128xf32>
      %23 = arith.maximumf %21, %22 : vector<128x128xf32>
      %c0_17 = arith.constant 0 : index
      %c0_18 = arith.constant 0 : index
      %24 = vector.load %arg6[%c0_17, %c0_18] : memref<128x128xbf16, #tpu.memory_space<vmem>>, vector<128x128xbf16>
      %c0_19 = arith.constant 0 : index
      %c0_20 = arith.constant 0 : index
      %25 = vector.load %arg7[%c0_19, %c0_20] : memref<1x128xf32, #tpu.memory_space<vmem>>, vector<1x128xf32>
      %26 = arith.truncf %23 : vector<128x128xf32> to vector<128x128xbf16>
      %cst_21 = arith.constant dense<0.000000e+00> : vector<128x128xf32>
      %27 = tpu.matmul %26, %24, %cst_21 {dimension_numbers = #tpu.dot_dimension_numbers<[1], [0], [0], [1], [0, 0, 1, 1], [], []>} : vector<128x128xbf16>, vector<128x128xbf16>, vector<128x128xf32> -> vector<128x128xf32>
      %28 = vector.broadcast %25 : vector<1x128xf32> to vector<128x128xf32>
      %29 = arith.addf %27, %28 : vector<128x128xf32>
      %c0_22 = arith.constant 0 : index
      %c0_23 = arith.constant 0 : index
      %30 = vector.load %arg9[%c0_22, %c0_23] : memref<128x128xf32, #tpu.memory_space<vmem>>, vector<128x128xf32>
      tpu.vector_store %arg9[%c0_22, %c0_23], %29 {strides = array<i32>} : memref<128x128xf32, #tpu.memory_space<vmem>>, vector<128x128xf32>,
    } else {
    }
    return
  }
  func.func @transform_0(%arg0: i32, %arg1: i32) -> (i32, i32) {
    %c0_i32 = arith.constant 0 : i32
    return %arg0, %arg1 : i32, i32
  }
  func.func @transform_1(%arg0: i32, %arg1: i32) -> (i32, i32) {
    %c0_i32 = arith.constant 0 : i32
    %c0_i32_0 = arith.constant 0 : i32
    %c0_i32_1 = arith.constant 0 : i32
    return %c0_i32, %c0_i32_0 : i32, i32
  }
  func.func @transform_2(%arg0: i32, %arg1: i32) -> (i32, i32) {
    %c0_i32 = arith.constant 0 : i32
    %c0_i32_0 = arith.constant 0 : i32
    %c0_i32_1 = arith.constant 0 : i32
    return %c0_i32, %c0_i32_0 : i32, i32
  }
  func.func @transform_3(%arg0: i32, %arg1: i32) -> (i32, i32) {
    %c0_i32 = arith.constant 0 : i32
    %c0_i32_0 = arith.constant 0 : i32
    %c0_i32_1 = arith.constant 0 : i32
    return %c0_i32, %c0_i32_0 : i32, i32
  }
  func.func @transform_4(%arg0: i32, %arg1: i32) -> (i32, i32) {
    %c0_i32 = arith.constant 0 : i32
    %c0_i32_0 = arith.constant 0 : i32
    %c0_i32_1 = arith.constant 0 : i32
    return %c0_i32, %c0_i32_0 : i32, i32
  }
  func.func @transform_5(%arg0: i32, %arg1: i32) -> (i32, i32) {
    %c0_i32 = arith.constant 0 : i32
    %c0_i32_0 = arith.constant 0 : i32
    %c0_i32_1 = arith.constant 0 : i32
    return %c0_i32, %c0_i32_0 : i32, i32
  }
  func.func @transform_6(%arg0: i32, %arg1: i32) -> (i32, i32) {
    %c0_i32 = arith.constant 0 : i32
    %c0_i32_0 = arith.constant 0 : i32
    return %arg0, %c0_i32 : i32, i32
  }
  func.func @transform_7(%arg0: i32, %arg1: i32) -> (i32, i32) {
    %c0_i32 = arith.constant 0 : i32
    %c0_i32_0 = arith.constant 0 : i32
    return %arg0, %c0_i32 : i32, i32
  }
}

</mosaic_0001>

<bundles_post_ra>
// kernel: autoencoder_forward.2
= control target key start
LH: loop header
LB: loop body
LE: loop exit
PB: predicated region body
PF: predicated region fallthrough
CT: control target
= control target key end

     0   :  { %s1158_s21 = smov 0   ;;  %s1274_s0 = inlined_call_operand.vmem [shape: bf16[256,64], index: 0, kind: input, shape index: {}]   ;;  %s1275_s1 = inlined_call_operand.vmem [shape: bf16[64,128], index: 1, kind: input, shape index: {}]   ;;  %s1276_s2 = inlined_call_operand.vmem [shape: f32[1,128], index: 2, kind: input, shape index: {}]   ;;  %s1277_s3 = inlined_call_operand.vmem [shape: bf16[128,128], index: 3, kind: input, shape index: {}]   ;;  %s1278_s4 = inlined_call_operand.vmem [shape: f32[1,128], index: 4, kind: input, shape index: {}]   ;;  %s1279_s5 = inlined_call_operand.vmem [shape: f32[256,128], index: 5, kind: output, shape index: {0}]   ;;  %s1280_s6 = inlined_call_operand.vmem [shape: bf16[256,128], index: 6, kind: output, shape index: {1}]  }
   0x1 LB: > { %s865_s22 = sadd.s32 4294967295, %s1121_s21   ;;  %p869_p0 = scmp.ge.s32.totalorder %s1121_s21, 1  ;;  %s1121_s21 = sphi %s1158_s21, %s17_s21  }
   0x2   : > { %p216_p1 = scmp.lt.s32.totalorder %s1121_s21, 3 }
   0x4   : > { %p217_p2 = pnand %p869_p0, %p216_p1 }
   0x5   : > { %s870_s25 = sshll.u32 (!%p217_p2), %s865_s22, 4 }
   0x6   : > { %220 = sbr.rel (%p217_p2) target bundleno = 462 (0x1ce), region = 40  ;;  %p252_p3 = scmp.lt.s32.totalorder (!%p217_p2), %s870_s25, 31 }
   0xb   : > { %v1095_v0 = vld [vmem:[%s1275_s1 + $0x18] sm:$0xff]   ;;  %v1096_v1 = vld [vmem:[%s1275_s1 + $0x10] sm:$0xff]   ;;  %v1097_v2 = vld [vmem:[%s1275_s1 + $0x8] sm:$0xff]   ;;  %s1282_s25 = smov (!%p252_p3, %s870_s25), 31  ;;  %vm365_vm0 = vcmask 523264  }
   0xc   : > { %1015 = vmatprep.subr.bf16.mxu0 %v1095_v0  ;;  %v1107_v3 = vld [vmem:[%s1277_s3 + $0x38] sm:$0xff]   ;;  %s871_s8 = sshll.u32 %s1282_s25, 2  ;;  %v1108_v4 = vld [vmem:[%s1277_s3 + $0x30] sm:$0xff]   ;;  %v1098_v6 = vld [vmem:[%s1275_s1] sm:$0xff]   ;;  %s873_s9 = sshll.u32 %s1282_s25, 3 }
   0xd   : > { %1016 = vmatpush3.bf16.msra.mxu0 %v1095_v0  ;;  %s1186_s11 = scalar_lea.vmem %s1274_s0, %s871_s8  ;;  %1071 = vmatprep.subr.bf16.mxu1 %v1107_v3  ;;  %v1109_v7 = vld [vmem:[%s1277_s3 + $0x28] sm:$0xff]   ;;  %v1110_v10 = vld [vmem:[%s1277_s3 + $0x20] sm:$0xff]   ;;  %v1111_v11 = vld [vmem:[%s1277_s3 + $0x18] sm:$0xff]   ;;  %s1238_s14 = scalar_lea.vmem %s1279_s5, %s873_s9 }
   0xe   : > { %1017 = vmatprep.subr.bf16.mxu0 %v1096_v1  ;;  %v1099_v5 = vld [vmem:[%s1186_s11] sm:$0xff]   ;;  %1079 = vmatpush3.bf16.msra.mxu1 %v1107_v3  ;;  %v1100_v8 = vld [vmem:[%s1186_s11 + $0x8] sm:$0xff]   ;;  %v1101_v9 = vld [vmem:[%s1186_s11 + $0x10] sm:$0xff]   ;;  %s1247_s17 = scalar_lea.vmem %s1280_s6, %s871_s8 }
   0xf   : > { %1072 = vmatprep.subr.bf16.mxu1 %v1108_v4  ;;  %1023 = vmatprep.mubr.msk.bf16.mxu0 %vm365_vm0, %v1099_v5  ;;  %v1102_v12 = vld [vmem:[%s1186_s11 + $0x18] sm:$0xff]   ;;  %v1103_v13 = vld [vmem:[%s1186_s11 + $0x20] sm:$0xff]   ;;  %v1104_v14 = vld [vmem:[%s1186_s11 + $0x28] sm:$0xff]  }
  0x10   : > { %v1105_v15 = vld [vmem:[%s1186_s11 + $0x30] sm:$0xff]   ;;  %v1106_v16 = vld [vmem:[%s1186_s11 + $0x38] sm:$0xff]   ;;  %v1113_v18 = vld [vmem:[%s1277_s3 + $0x8] sm:$0xff]  }
  0x11   : > { %1018 = vmatpush3.bf16.msra.mxu0 %v1096_v1  ;;  %v1112_v17 = vld [vmem:[%s1277_s3 + $0x10] sm:$0xff]   ;;  %v1114_v19 = vld [vmem:[%s1277_s3] sm:$0xff]  }
  0x12   : > { %1019 = vmatprep.subr.bf16.mxu0 %v1097_v2  ;;  %1080 = vmatpush3.bf16.msra.mxu1 %v1108_v4  ;;  %v876_v22 = vld [vmem:[%s1276_s2] ss:$0 sm:$0xff] }
  0x13   : > { %1073 = vmatprep.subr.bf16.mxu1 %v1109_v7 }
  0x15   : > { %1020 = vmatpush3.bf16.msra.mxu0 %v1097_v2 }
  0x16   : > { %1021 = vmatprep.subr.bf16.mxu0 %v1098_v6  ;;  %1081 = vmatpush3.bf16.msra.mxu1 %v1109_v7 }
  0x17   : > { %1074 = vmatprep.subr.bf16.mxu1 %v1110_v10 }
  0x19   : > { %1022 = vmatpush3.bf16.msra.mxu0 %v1098_v6 }
  0x1a   : > { %1039 = vmatprep.subr.bf16.mxu0 %v1107_v3  ;;  %1082 = vmatpush3.bf16.msra.mxu1 %v1110_v10 }
  0x1b   : > { %1075 = vmatprep.subr.bf16.mxu1 %v1111_v11 }
  0x1c   : > { %1024 = vmatmul.mubr.msk.bf16.vlgmr.msra.gmra.mxu0 %vm365_vm0, %v1100_v8 }
  0x1d   : > { %1027 = vmatprep.mubr.msk.bf16.mxu0 %vm365_vm0, %v1101_v9  ;;  %1040 = vmatpush3.bf16.msra.mxu0 %v1107_v3 }
  0x1e   : > { %1041 = vmatprep.subr.bf16.mxu0 %v1108_v4  ;;  %1083 = vmatpush3.bf16.msra.mxu1 %v1111_v11 }
  0x1f   : > { %1076 = vmatprep.subr.bf16.mxu1 %v1112_v17 }
  0x21   : > { %1042 = vmatpush3.bf16.msra.mxu0 %v1108_v4 }
  0x22   : > { %1043 = vmatprep.subr.bf16.mxu0 %v1109_v7  ;;  %1084 = vmatpush3.bf16.msra.mxu1 %v1112_v17 }
  0x23   : > { %1077 = vmatprep.subr.bf16.mxu1 %v1113_v18 }
  0x24   : > { %1028 = vmatmul.mubr.msk.bf16.gmra.mxu0 %vm365_vm0, %v1102_v12 }
  0x25   : > { %1031 = vmatprep.mubr.msk.bf16.mxu0 %vm365_vm0, %v1103_v13  ;;  %1044 = vmatpush3.bf16.msra.mxu0 %v1109_v7  ;;  %v897_v13 = vld [vmem:[%s1278_s4] ss:$0 sm:$0xff] }
  0x26   : > { %1045 = vmatprep.subr.bf16.mxu0 %v1110_v10  ;;  %1085 = vmatpush3.bf16.msra.mxu1 %v1113_v18 }
  0x27   : > { %1078 = vmatprep.subr.bf16.mxu1 %v1114_v19 }
  0x29   : > { %1046 = vmatpush3.bf16.msra.mxu0 %v1110_v10 }
  0x2a   : > { %1047 = vmatprep.subr.bf16.mxu0 %v1111_v11  ;;  %1086 = vmatpush3.bf16.msra.mxu1 %v1114_v19 }
  0x2c   : > { %1032 = vmatmul.mubr.msk.bf16.gmra.mxu0 %vm365_vm0, %v1104_v14 }
  0x2d   : > { %1035 = vmatprep.mubr.msk.bf16.mxu0 %vm365_vm0, %v1105_v15  ;;  %1048 = vmatpush3.bf16.msra.mxu0 %v1111_v11 }
  0x2e   : > { %1049 = vmatprep.subr.bf16.mxu0 %v1112_v17 }
  0x31   : > { %1050 = vmatpush3.bf16.msra.mxu0 %v1112_v17 }
  0x32   : > { %1051 = vmatprep.subr.bf16.mxu0 %v1113_v18 }
  0x34   : > { %1036 = vmatmul.mubr.msk.bf16.gmra.mxu0 %vm365_vm0, %v1106_v16 }
  0x35   : > { %1052 = vmatpush3.bf16.msra.mxu0 %v1113_v18 }
  0x36   : > { %1053 = vmatprep.subr.bf16.mxu0 %v1114_v19 }
  0x39   : > { %1054 = vmatpush3.bf16.msra.mxu0 %v1114_v19 }
  0xdc   : > { %v1025_v20 = vpop.f32.mrf.mxu0 }
  0xdd   : > { %v433_v26 = vadd.f32 %v1025_v20, %v876_v22 }
  0xde   : > { %v424_v21 = vpop.f32.mrf.mxu0 }
  0xdf   : > { %v425_v24 = vadd.f32 %v876_v22, %v424_v21  ;;  %v489_v33 = vmax.f32 %v433_v26, 0.0 }
  0xe0   : > { %v1026_v23 = vpop.f32.mrf.mxu0 }
  0xe1   : > { %v436_v25 = vadd.f32 %v1026_v23, %v876_v22  ;;  %v487_v31 = vmax.f32 %v425_v24, 0.0 }
  0xe2   : > { %v427_v27 = vpop.f32.mrf.mxu0 }
  0xe3   : > { %v428_v28 = vadd.f32 %v876_v22, %v427_v27  ;;  %v490_v29 = vmax.f32 %v436_v25, 0.0 }
  0xe4   : > { %v1029_v30 = vpop.f32.mrf.mxu0 }
  0xe5   : > { %v488_v32 = vmax.f32 %v428_v28, 0.0  ;;  %v521_v36 = vpack.c.bf16 %v490_v29, %v489_v33  ;;  %v449_v40 = vadd.f32 %v1029_v30, %v876_v22 }
  0xe6   : > { %v440_v34 = vpop.f32.mrf.mxu0 }
  0xe7   : > { %v520_v35 = vpack.c.bf16 %v488_v32, %v487_v31  ;;  %v441_v38 = vadd.f32 %v876_v22, %v440_v34  ;;  %v493_v47 = vmax.f32 %v449_v40, 0.0 }
  0xe8   : > { %v1030_v37 = vpop.f32.mrf.mxu0 }
  0xe9   : > { %v452_v39 = vadd.f32 %v1030_v37, %v876_v22  ;;  %1055 = vmatprep.mubr.bf16.mxu0 %v520_v35  ;;  %v491_v45 = vmax.f32 %v441_v38, 0.0 }
  0xea   : > { %v443_v41 = vpop.f32.mrf.mxu0  ;;  %1056 = vmatmul.mubr.bf16.vlgmr.msra.gmra.mxu0 %v521_v36 }
  0xeb   : > { %v444_v42 = vadd.f32 %v876_v22, %v443_v41  ;;  %v494_v43 = vmax.f32 %v452_v39, 0.0 }
  0xec   : > { %v1033_v44 = vpop.f32.mrf.mxu0 }
  0xed   : > { %v492_v46 = vmax.f32 %v444_v42, 0.0  ;;  %v523_v50 = vpack.c.bf16 %v494_v43, %v493_v47  ;;  %v465_v54 = vadd.f32 %v1033_v44, %v876_v22 }
  0xee   : > { %v456_v48 = vpop.f32.mrf.mxu0 }
  0xef   : > { %v522_v49 = vpack.c.bf16 %v492_v46, %v491_v45  ;;  %v457_v52 = vadd.f32 %v876_v22, %v456_v48  ;;  %v497_v61 = vmax.f32 %v465_v54, 0.0 }
  0xf0   : > { %v1034_v51 = vpop.f32.mrf.mxu0 }
  0xf1   : > { %v468_v53 = vadd.f32 %v1034_v51, %v876_v22  ;;  %1059 = vmatprep.mubr.bf16.mxu1 %v522_v49  ;;  %v495_v59 = vmax.f32 %v457_v52, 0.0 }
  0xf2   : > { %v459_v55 = vpop.f32.mrf.mxu0  ;;  %1060 = vmatmul.mubr.bf16.vlgmr.msra.gmra.mxu1 %v523_v50 }
  0xf3   : > { %v460_v56 = vadd.f32 %v876_v22, %v459_v55  ;;  %v498_v57 = vmax.f32 %v468_v53, 0.0 }
  0xf4   : > { %v1037_v58 = vpop.f32.mrf.mxu0 }
  0xf5   : > { %v496_v60 = vmax.f32 %v460_v56, 0.0  ;;  %v525_v0 = vpack.c.bf16 %v498_v57, %v497_v61  ;;  %v481_v4 = vadd.f32 %v1037_v58, %v876_v22 }
  0xf6   : > { %v472_v62 = vpop.f32.mrf.mxu0 }
  0xf7   : > { %v524_v63 = vpack.c.bf16 %v496_v60, %v495_v59  ;;  %v473_v2 = vadd.f32 %v876_v22, %v472_v62  ;;  %v501_v10 = vmax.f32 %v481_v4, 0.0 }
  0xf8   : > { %v1038_v1 = vpop.f32.mrf.mxu0 }
  0xf9   : > { %v484_v3 = vadd.f32 %v1038_v1, %v876_v22  ;;  %1063 = vmatprep.mubr.bf16.mxu1 %v524_v63  ;;  %v499_v8 = vmax.f32 %v473_v2, 0.0 }
  0xfa   : > { %v475_v5 = vpop.f32.mrf.mxu0  ;;  %1064 = vmatmul.mubr.bf16.gmra.mxu1 %v525_v0 }
  0xfb   : > { %v476_v6 = vadd.f32 %v876_v22, %v475_v5  ;;  %v502_v7 = vmax.f32 %v484_v3, 0.0 }
  0xfd   : > { %v500_v9 = vmax.f32 %v476_v6, 0.0  ;;  %v527_v12 = vpack.c.bf16 %v502_v7, %v501_v10 }
  0xff   : > { %v526_v11 = vpack.c.bf16 %v500_v9, %v499_v8 }
 0x101   : > { %1067 = vmatprep.mubr.bf16.mxu1 %v526_v11 }
 0x102   : > { %1068 = vmatmul.mubr.bf16.gmra.mxu1 %v527_v12 }
 0x1aa   : > { %v1057_v14 = vpop.f32.mrf.mxu0 }
 0x1ab   : > { %v625_v15 = vadd.f32 %v1057_v14, %v897_v13 }
 0x1ac   : > { %v616_v16 = vpop.f32.mrf.mxu0 }
 0x1ad   : > { %681 = vst [vmem:[%s1238_s14 + $0x10] sm:$0xff] %v625_v15  ;;  %v617_v17 = vadd.f32 %v897_v13, %v616_v16 }
 0x1ae   : > { %v1058_v18 = vpop.f32.mrf.mxu0 }
 0x1af   : > { %679 = vst [vmem:[%s1238_s14] sm:$0xff] %v617_v17  ;;  %v628_v19 = vadd.f32 %v1058_v18, %v897_v13 }
 0x1b0   : > { %v619_v20 = vpop.f32.mrf.mxu0 }
 0x1b1   : > { %682 = vst [vmem:[%s1238_s14 + $0x18] sm:$0xff] %v628_v19  ;;  %v948_v21 = vpack.c.bf16 %v628_v19, %v625_v15  ;;  %v620_v22 = vadd.f32 %v897_v13, %v619_v20 }
 0x1b2   : > { %v1061_v23 = vpop.f32.mrf.mxu1 }
 0x1b3   : > { %980 = vst [vmem:[%s1247_s17 + $0x8] sm:$0xff] %v948_v21   ;;  %680 = vst [vmem:[%s1238_s14 + $0x8] sm:$0xff] %v620_v22  ;;  %v943_v24 = vpack.c.bf16 %v620_v22, %v617_v17  ;;  %v641_v25 = vadd.f32 %v1061_v23, %v897_v13 }
 0x1b4   : > { %v632_v26 = vpop.f32.mrf.mxu1 }
 0x1b5   : > { %944 = vst [vmem:[%s1247_s17] sm:$0xff] %v943_v24   ;;  %685 = vst [vmem:[%s1238_s14 + $0x30] sm:$0xff] %v641_v25  ;;  %v633_v27 = vadd.f32 %v897_v13, %v632_v26 }
 0x1b6   : > { %v1062_v28 = vpop.f32.mrf.mxu1 }
 0x1b7   : > { %683 = vst [vmem:[%s1238_s14 + $0x20] sm:$0xff] %v633_v27  ;;  %v644_v29 = vadd.f32 %v1062_v28, %v897_v13 }
 0x1b8   : > { %v635_v30 = vpop.f32.mrf.mxu1 }
 0x1b9   : > { %686 = vst [vmem:[%s1238_s14 + $0x38] sm:$0xff] %v644_v29  ;;  %v958_v31 = vpack.c.bf16 %v644_v29, %v641_v25  ;;  %v636_v32 = vadd.f32 %v897_v13, %v635_v30 }
 0x1ba   : > { %v1065_v33 = vpop.f32.mrf.mxu1 }
 0x1bb   : > { %982 = vst [vmem:[%s1247_s17 + $0x18] sm:$0xff] %v958_v31   ;;  %684 = vst [vmem:[%s1238_s14 + $0x28] sm:$0xff] %v636_v32  ;;  %v953_v34 = vpack.c.bf16 %v636_v32, %v633_v27  ;;  %v657_v35 = vadd.f32 %v1065_v33, %v897_v13 }
 0x1bc   : > { %v648_v36 = vpop.f32.mrf.mxu1 }
 0x1bd   : > { %981 = vst [vmem:[%s1247_s17 + $0x10] sm:$0xff] %v953_v34   ;;  %689 = vst [vmem:[%s1238_s14 + $0x50] sm:$0xff] %v657_v35  ;;  %v649_v37 = vadd.f32 %v897_v13, %v648_v36 }
 0x1be   : > { %v1066_v38 = vpop.f32.mrf.mxu1 }
 0x1bf   : > { %687 = vst [vmem:[%s1238_s14 + $0x40] sm:$0xff] %v649_v37  ;;  %v660_v39 = vadd.f32 %v1066_v38, %v897_v13 }
 0x1c0   : > { %v651_v40 = vpop.f32.mrf.mxu1 }
 0x1c1   : > { %690 = vst [vmem:[%s1238_s14 + $0x58] sm:$0xff] %v660_v39  ;;  %v968_v41 = vpack.c.bf16 %v660_v39, %v657_v35  ;;  %v652_v42 = vadd.f32 %v897_v13, %v651_v40 }
 0x1c2   : > { %v1069_v43 = vpop.f32.mrf.mxu1 }
 0x1c3   : > { %984 = vst [vmem:[%s1247_s17 + $0x28] sm:$0xff] %v968_v41   ;;  %688 = vst [vmem:[%s1238_s14 + $0x48] sm:$0xff] %v652_v42  ;;  %v963_v44 = vpack.c.bf16 %v652_v42, %v649_v37  ;;  %v673_v45 = vadd.f32 %v1069_v43, %v897_v13 }
 0x1c4   : > { %v664_v46 = vpop.f32.mrf.mxu1 }
 0x1c5   : > { %983 = vst [vmem:[%s1247_s17 + $0x20] sm:$0xff] %v963_v44   ;;  %693 = vst [vmem:[%s1238_s14 + $0x70] sm:$0xff] %v673_v45  ;;  %v665_v47 = vadd.f32 %v897_v13, %v664_v46 }
 0x1c6   : > { %v1070_v48 = vpop.f32.mrf.mxu1 }
 0x1c7   : > { %691 = vst [vmem:[%s1238_s14 + $0x60] sm:$0xff] %v665_v47  ;;  %v676_v49 = vadd.f32 %v1070_v48, %v897_v13 }
 0x1c8   : > { %v667_v50 = vpop.f32.mrf.mxu1 }
 0x1c9   : > { %694 = vst [vmem:[%s1238_s14 + $0x78] sm:$0xff] %v676_v49  ;;  %v978_v51 = vpack.c.bf16 %v676_v49, %v673_v45  ;;  %v668_v52 = vadd.f32 %v897_v13, %v667_v50 }
 0x1cb   : > { %986 = vst [vmem:[%s1247_s17 + $0x38] sm:$0xff] %v978_v51   ;;  %692 = vst [vmem:[%s1238_s14 + $0x68] sm:$0xff] %v668_v52  ;;  %v973_v53 = vpack.c.bf16 %v668_v52, %v665_v47 }
 0x1cd   : > { %985 = vst [vmem:[%s1247_s17 + $0x30] sm:$0xff] %v973_v53  }
 0x1ce PF: > { %s17_s21 = sadd.s32 1, %s1121_s21  }
 0x1cf   : > { %p14_p4 = scmp.ge.s32.totalorder %s17_s21, 4  }
 0x1d1   :  { %16 = sbr.rel (!%p14_p4) target bundleno = 1 (0x1), region = 82 }

// kernel: autoencoder_forward.3
= control target key start
LH: loop header
LB: loop body
LE: loop exit
PB: predicated region body
PF: predicated region fallthrough
CT: control target
= control target key end

     0   :  { %s1602_s24 = smov 0   ;;  %s1604_s25 = smov 0   ;;  %s1799_s0 = inlined_call_operand.vmem [shape: bf16[256,256], index: 0, kind: input, shape index: {}]   ;;  %s1800_s1 = inlined_call_operand.vmem [shape: bf16[256,128], index: 1, kind: input, shape index: {}]   ;;  %s1801_s2 = inlined_call_operand.vmem [shape: bf16[128,128], index: 2, kind: input, shape index: {}]   ;;  %s1802_s3 = inlined_call_operand.vmem [shape: f32[1,128], index: 3, kind: input, shape index: {}]   ;;  %s1803_s4 = inlined_call_operand.vmem [shape: bf16[128,128], index: 4, kind: input, shape index: {}]   ;;  %s1804_s5 = inlined_call_operand.vmem [shape: f32[1,128], index: 5, kind: input, shape index: {}]   ;;  %s1805_s6 = inlined_call_operand.vmem [shape: f32[256,128], index: 6, kind: output, shape index: {0}]   ;;  %s1806_s7 = inlined_call_operand.vmem [shape: f32[256,128], index: 7, kind: output, shape index: {1}]  }
   0x1   :  { %s1606_s26 = smov 0  }
   0x2 LB: > { %s30_s27 = sadd.s32 1, %s1556_s25  ;;  %p1236_p0 = scmp.ge.s32.totalorder %s1560_s26, 1  ;;  %s1560_s26 = sphi %s1606_s26, %s18_s26   ;;  %s1556_s25 = sphi %s1604_s25, %s1808_s25   ;;  %s1552_s24 = sphi %s1602_s24, %s1807_s24  }
   0x3   : > { %p32_p1 = scmp.ge.s32.totalorder %s30_s27, 2  ;;  %p261_p2 = scmp.lt.s32.totalorder %s1560_s26, 3 }
   0x5   : > { %s1810_s27 = smov (%p32_p1, %s30_s27), 0  ;;  %p262_p3 = pnand %p1236_p0, %p261_p2 }
   0x6   : > { %s1237_s30 = sshll.u32 (!%p262_p3), %s1552_s24, 4 }
   0x7   : > { %265 = sbr.rel (%p262_p3) target bundleno = 712 (0x2c8), region = 44  ;;  %p305_p4 = scmp.lt.s32.totalorder (!%p262_p3), %s1237_s30, 31 }
   0xc   : > { %v1482_v0 = vld [vmem:[%s1800_s1 + $0x78] sm:$0xff]   ;;  %v1484_v2 = vld [vmem:[%s1800_s1 + $0x70] sm:$0xff]   ;;  %v1486_v4 = vld [vmem:[%s1800_s1 + $0x68] sm:$0xff]   ;;  %s1812_s30 = smov (!%p305_p4, %s1237_s30), 31 }
   0xd   : > { %v1483_v1 = vld [vmem:[%s1800_s1 + $0x38] sm:$0xff]   ;;  %1297 = vmatprep.subr.bf16.mxu0 %v1482_v0  ;;  %v1485_v3 = vld [vmem:[%s1800_s1 + $0x30] sm:$0xff]   ;;  %v1487_v5 = vld [vmem:[%s1800_s1 + $0x28] sm:$0xff]   ;;  %s1644_s22 = sshll.u32 %s1812_s30, 3 }
   0xe   : > { %1298 = vmatpush3.bf16.msra.mxu0 %v1483_v1  ;;  %v1488_v6 = vld [vmem:[%s1800_s1 + $0x60] sm:$0xff]   ;;  %v1490_v8 = vld [vmem:[%s1800_s1 + $0x58] sm:$0xff]   ;;  %s1653_s8 = scalar_lea.vmem %s1799_s0, %s1644_s22  ;;  %v1492_v10 = vld [vmem:[%s1800_s1 + $0x50] sm:$0xff]   ;;  %s1723_s24 = scalar_lea.vmem %s1805_s6, %s1644_s22 }
   0xf   : > { %1299 = vmatprep.subr.bf16.mxu0 %v1484_v2  ;;  %v1489_v7 = vld [vmem:[%s1800_s1 + $0x20] sm:$0xff]   ;;  %v1491_v9 = vld [vmem:[%s1800_s1 + $0x18] sm:$0xff]   ;;  %v1493_v12 = vld [vmem:[%s1800_s1 + $0x10] sm:$0xff]   ;;  %s1772_s29 = scalar_lea.vmem %s1806_s7, %s1644_s22 }
  0x10   : > { %v1500_v11 = vld [vmem:[%s1653_s8 + $0x4] ss:$8 sps:$4 sm:$0xff]   ;;  %v1522_v17 = vld [vmem:[%s1801_s2 + $0x38] sm:$0xff]   ;;  %v1498_v18 = vld [vmem:[%s1653_s8] ss:$8 sps:$4 sm:$0xff]  }
  0x11   : > { %625 = vmatprep.mubr.bf16.mxu0 %v1500_v11  ;;  %v1494_v13 = vld [vmem:[%s1800_s1 + $0x48] sm:$0xff]   ;;  %v1496_v15 = vld [vmem:[%s1800_s1 + $0x40] sm:$0xff]   ;;  %v1501_v19 = vld [vmem:[%s1653_s8 + $0x14] ss:$8 sps:$4 sm:$0xff]   ;;  %1393 = vmatprep.subr.bf16.mxu1 %v1522_v17 }
  0x12   : > { %1300 = vmatpush3.bf16.msra.mxu0 %v1485_v3  ;;  %v1495_v14 = vld [vmem:[%s1800_s1 + $0x8] sm:$0xff]   ;;  %v1497_v16 = vld [vmem:[%s1800_s1] sm:$0xff]   ;;  %1394 = vmatpush3.bf16.msra.mxu1 %v1522_v17  ;;  %v1503_v20 = vld [vmem:[%s1653_s8 + $0x10] ss:$8 sps:$4 sm:$0xff]  }
  0x13   : > { %1301 = vmatprep.subr.bf16.mxu0 %v1486_v4  ;;  %v1504_v21 = vld [vmem:[%s1653_s8 + $0x24] ss:$8 sps:$4 sm:$0xff]   ;;  %v1506_v22 = vld [vmem:[%s1653_s8 + $0x20] ss:$8 sps:$4 sm:$0xff]   ;;  %v1507_v23 = vld [vmem:[%s1653_s8 + $0x34] ss:$8 sps:$4 sm:$0xff]  }
  0x14   : > { %v1509_v24 = vld [vmem:[%s1653_s8 + $0x30] ss:$8 sps:$4 sm:$0xff]   ;;  %v1510_v25 = vld [vmem:[%s1653_s8 + $0x44] ss:$8 sps:$4 sm:$0xff]   ;;  %v1512_v26 = vld [vmem:[%s1653_s8 + $0x40] ss:$8 sps:$4 sm:$0xff]  }
  0x15   : > { %v1513_v27 = vld [vmem:[%s1653_s8 + $0x54] ss:$8 sps:$4 sm:$0xff]   ;;  %v1515_v28 = vld [vmem:[%s1653_s8 + $0x50] ss:$8 sps:$4 sm:$0xff]   ;;  %v1516_v29 = vld [vmem:[%s1653_s8 + $0x64] ss:$8 sps:$4 sm:$0xff]  }
  0x16   : > { %1302 = vmatpush3.bf16.msra.mxu0 %v1487_v5  ;;  %v1518_v30 = vld [vmem:[%s1653_s8 + $0x60] ss:$8 sps:$4 sm:$0xff]   ;;  %v1519_v31 = vld [vmem:[%s1653_s8 + $0x74] ss:$8 sps:$4 sm:$0xff]   ;;  %v1521_v32 = vld [vmem:[%s1653_s8 + $0x70] ss:$8 sps:$4 sm:$0xff]  }
  0x17   : > { %1303 = vmatprep.subr.bf16.mxu0 %v1488_v6  ;;  %v1523_v33 = vld [vmem:[%s1801_s2 + $0x30] sm:$0xff]   ;;  %v1524_v34 = vld [vmem:[%s1801_s2 + $0x28] sm:$0xff]   ;;  %v1525_v35 = vld [vmem:[%s1801_s2 + $0x20] sm:$0xff]  }
  0x18   : > { %1395 = vmatprep.subr.bf16.mxu1 %v1523_v33  ;;  %v1526_v36 = vld [vmem:[%s1801_s2 + $0x18] sm:$0xff]   ;;  %v1527_v37 = vld [vmem:[%s1801_s2 + $0x10] sm:$0xff]   ;;  %v1528_v38 = vld [vmem:[%s1801_s2 + $0x8] sm:$0xff]  }
  0x19   : > { %1396 = vmatpush3.bf16.msra.mxu1 %v1523_v33  ;;  %v1529_v39 = vld [vmem:[%s1801_s2] sm:$0xff]   ;;  %v1530_v40 = vld [vmem:[%s1803_s4 + $0x38] sm:$0xff]   ;;  %v1531_v58 = vld [vmem:[%s1803_s4 + $0x30] sm:$0xff]  }
  0x1a   : > { %1304 = vmatpush3.bf16.msra.mxu0 %v1489_v7  ;;  %1397 = vmatprep.subr.bf16.mxu1 %v1524_v34  ;;  %v1532_v62 = vld [vmem:[%s1803_s4 + $0x28] sm:$0xff]   ;;  %v1533_v3 = vld [vmem:[%s1803_s4 + $0x20] sm:$0xff]   ;;  %v1534_v7 = vld [vmem:[%s1803_s4 + $0x18] sm:$0xff]  }
  0x1b   : > { %1305 = vmatprep.subr.bf16.mxu0 %v1490_v8 }
  0x1d   : > { %1398 = vmatpush3.bf16.msra.mxu1 %v1524_v34 }
  0x1e   : > { %1306 = vmatpush3.bf16.msra.mxu0 %v1491_v9  ;;  %1399 = vmatprep.subr.bf16.mxu1 %v1525_v35 }
  0x1f   : > { %1307 = vmatprep.subr.bf16.mxu0 %v1492_v10 }
  0x21   : > { %1400 = vmatpush3.bf16.msra.mxu1 %v1525_v35 }
  0x22   : > { %1308 = vmatpush3.bf16.msra.mxu0 %v1493_v12  ;;  %1401 = vmatprep.subr.bf16.mxu1 %v1526_v36 }
  0x23   : > { %1309 = vmatprep.subr.bf16.mxu0 %v1494_v13 }
  0x25   : > { %1402 = vmatpush3.bf16.msra.mxu1 %v1526_v36 }
  0x26   : > { %1310 = vmatpush3.bf16.msra.mxu0 %v1495_v14  ;;  %1403 = vmatprep.subr.bf16.mxu1 %v1527_v37 }
  0x27   : > { %1311 = vmatprep.subr.bf16.mxu0 %v1496_v15 }
  0x29   : > { %1404 = vmatpush3.bf16.msra.mxu1 %v1527_v37  ;;  %v1535_v37 = vld [vmem:[%s1803_s4 + $0x10] sm:$0xff]  }
  0x2a   : > { %1312 = vmatpush3.bf16.msra.mxu0 %v1497_v16  ;;  %1405 = vmatprep.subr.bf16.mxu1 %v1528_v38 }
  0x2d   : > { %626 = vmatmul.mubr.bf16.vlgmr.msra.gmra.mxu0 %v1498_v18  ;;  %1406 = vmatpush3.bf16.msra.mxu1 %v1528_v38  ;;  %v1536_v38 = vld [vmem:[%s1803_s4 + $0x8] sm:$0xff]  }
  0x2e   : > { %633 = vmatprep.mubr.bf16.mxu0 %v1501_v19  ;;  %1407 = vmatprep.subr.bf16.mxu1 %v1529_v39 }
  0x31   : > { %1408 = vmatpush3.bf16.msra.mxu1 %v1529_v39  ;;  %v1537_v39 = vld [vmem:[%s1803_s4] sm:$0xff]  }
  0x32   : > { %1425 = vmatprep.subr.bf16.mxu1 %v1530_v40 }
  0x35   : > { %634 = vmatmul.mubr.bf16.gmra.mxu0 %v1503_v20 }
  0x36   : > { %641 = vmatprep.mubr.bf16.mxu0 %v1504_v21 }
  0x3d   : > { %642 = vmatmul.mubr.bf16.gmra.mxu0 %v1506_v22 }
  0x3e   : > { %649 = vmatprep.mubr.bf16.mxu0 %v1507_v23 }
  0x45   : > { %650 = vmatmul.mubr.bf16.gmra.mxu0 %v1509_v24 }
  0x46   : > { %657 = vmatprep.mubr.bf16.mxu0 %v1510_v25 }
  0x4d   : > { %658 = vmatmul.mubr.bf16.gmra.mxu0 %v1512_v26 }
  0x4e   : > { %665 = vmatprep.mubr.bf16.mxu0 %v1513_v27 }
  0x55   : > { %666 = vmatmul.mubr.bf16.gmra.mxu0 %v1515_v28 }
  0x56   : > { %673 = vmatprep.mubr.bf16.mxu0 %v1516_v29 }
  0x5d   : > { %674 = vmatmul.mubr.bf16.gmra.mxu0 %v1518_v30 }
  0x5e   : > { %681 = vmatprep.mubr.bf16.mxu0 %v1519_v31 }
  0x65   : > { %682 = vmatmul.mubr.bf16.gmra.mxu0 %v1521_v32 }
  0xed   : > { %v1313_v41 = vpop.f32.mrf.mxu0 }
  0xef   : > { %v1314_v42 = vpop.f32.mrf.mxu0 }
  0xf0   : > { %v1315_v43 = vadd.f32 %v1314_v42, %v1313_v41  ;;  %v1276_v42 = vld [vmem:[%s1802_s3] ss:$0 sm:$0xff] }
  0xf1   : > { %v1316_v44 = vpop.f32.mrf.mxu0 }
  0xf2   : > { %706 = vst [vmem:[%s1723_s24] sm:$0xff] %v1315_v43 }
  0xf3   : > { %v1317_v45 = vpop.f32.mrf.mxu0 }
  0xf4   : > { %v1318_v46 = vadd.f32 %v1317_v45, %v1316_v44 }
  0xf5   : > { %v1319_v47 = vpop.f32.mrf.mxu0 }
  0xf6   : > { %707 = vst [vmem:[%s1723_s24 + $0x8] sm:$0xff] %v1318_v46  ;;  %v758_v50 = vpack.c.bf16 %v1318_v46, %v1315_v43 }
  0xf7   : > { %v1320_v48 = vpop.f32.mrf.mxu0 }
  0xf8   : > { %v1321_v49 = vadd.f32 %v1320_v48, %v1319_v47  ;;  %1409 = vmatprep.mubr.bf16.mxu1 %v758_v50 }
  0xf9   : > { %v1322_v51 = vpop.f32.mrf.mxu0 }
  0xfa   : > { %708 = vst [vmem:[%s1723_s24 + $0x10] sm:$0xff] %v1321_v49 }
  0xfb   : > { %v1323_v52 = vpop.f32.mrf.mxu0 }
  0xfc   : > { %v1324_v53 = vadd.f32 %v1323_v52, %v1322_v51 }
  0xfd   : > { %v1325_v54 = vpop.f32.mrf.mxu0 }
  0xfe   : > { %709 = vst [vmem:[%s1723_s24 + $0x18] sm:$0xff] %v1324_v53  ;;  %v759_v57 = vpack.c.bf16 %v1324_v53, %v1321_v49 }
  0xff   : > { %v1326_v55 = vpop.f32.mrf.mxu0 }
 0x100   : > { %v1327_v56 = vadd.f32 %v1326_v55, %v1325_v54  ;;  %1410 = vmatmul.mubr.bf16.vlgmr.msra.gmra.mxu1 %v759_v57 }
 0x101   : > { %v1328_v59 = vpop.f32.mrf.mxu0  ;;  %1426 = vmatpush3.bf16.msra.mxu1 %v1530_v40 }
 0x102   : > { %710 = vst [vmem:[%s1723_s24 + $0x20] sm:$0xff] %v1327_v56  ;;  %1427 = vmatprep.subr.bf16.mxu1 %v1531_v58 }
 0x103   : > { %v1329_v60 = vpop.f32.mrf.mxu0 }
 0x104   : > { %v1330_v61 = vadd.f32 %v1329_v60, %v1328_v59 }
 0x105   : > { %v1331_v63 = vpop.f32.mrf.mxu0  ;;  %1428 = vmatpush3.bf16.msra.mxu1 %v1531_v58 }
 0x106   : > { %711 = vst [vmem:[%s1723_s24 + $0x28] sm:$0xff] %v1330_v61  ;;  %v760_v2 = vpack.c.bf16 %v1330_v61, %v1327_v56  ;;  %1429 = vmatprep.subr.bf16.mxu1 %v1532_v62 }
 0x107   : > { %v1332_v0 = vpop.f32.mrf.mxu0 }
 0x108   : > { %v1333_v1 = vadd.f32 %v1332_v0, %v1331_v63  ;;  %1413 = vmatprep.mubr.bf16.mxu1 %v760_v2 }
 0x109   : > { %v1334_v4 = vpop.f32.mrf.mxu0  ;;  %1430 = vmatpush3.bf16.msra.mxu1 %v1532_v62 }
 0x10a   : > { %712 = vst [vmem:[%s1723_s24 + $0x30] sm:$0xff] %v1333_v1  ;;  %1431 = vmatprep.subr.bf16.mxu1 %v1533_v3 }
 0x10b   : > { %v1335_v5 = vpop.f32.mrf.mxu0 }
 0x10c   : > { %v1336_v6 = vadd.f32 %v1335_v5, %v1334_v4 }
 0x10d   : > { %v1337_v8 = vpop.f32.mrf.mxu0  ;;  %1432 = vmatpush3.bf16.msra.mxu1 %v1533_v3 }
 0x10e   : > { %713 = vst [vmem:[%s1723_s24 + $0x38] sm:$0xff] %v1336_v6  ;;  %v761_v11 = vpack.c.bf16 %v1336_v6, %v1333_v1  ;;  %1433 = vmatprep.subr.bf16.mxu1 %v1534_v7 }
 0x10f   : > { %v1338_v9 = vpop.f32.mrf.mxu0 }
 0x110   : > { %v1339_v10 = vadd.f32 %v1338_v9, %v1337_v8  ;;  %1414 = vmatmul.mubr.bf16.gmra.mxu1 %v761_v11 }
 0x111   : > { %v1340_v12 = vpop.f32.mrf.mxu0  ;;  %1434 = vmatpush3.bf16.msra.mxu1 %v1534_v7 }
 0x112   : > { %714 = vst [vmem:[%s1723_s24 + $0x40] sm:$0xff] %v1339_v10  ;;  %1435 = vmatprep.subr.bf16.mxu1 %v1535_v37 }
 0x113   : > { %v1341_v13 = vpop.f32.mrf.mxu0 }
 0x114   : > { %v1342_v14 = vadd.f32 %v1341_v13, %v1340_v12 }
 0x115   : > { %v1343_v15 = vpop.f32.mrf.mxu0  ;;  %1436 = vmatpush3.bf16.msra.mxu1 %v1535_v37 }
 0x116   : > { %715 = vst [vmem:[%s1723_s24 + $0x48] sm:$0xff] %v1342_v14  ;;  %v762_v18 = vpack.c.bf16 %v1342_v14, %v1339_v10  ;;  %1437 = vmatprep.subr.bf16.mxu1 %v1536_v38 }
 0x117   : > { %v1344_v16 = vpop.f32.mrf.mxu0 }
 0x118   : > { %v1345_v17 = vadd.f32 %v1344_v16, %v1343_v15  ;;  %1417 = vmatprep.mubr.bf16.mxu1 %v762_v18 }
 0x119   : > { %v1346_v19 = vpop.f32.mrf.mxu0  ;;  %1438 = vmatpush3.bf16.msra.mxu1 %v1536_v38 }
 0x11a   : > { %716 = vst [vmem:[%s1723_s24 + $0x50] sm:$0xff] %v1345_v17  ;;  %1439 = vmatprep.subr.bf16.mxu1 %v1537_v39 }
 0x11b   : > { %v1347_v20 = vpop.f32.mrf.mxu0 }
 0x11c   : > { %v1348_v21 = vadd.f32 %v1347_v20, %v1346_v19 }
 0x11d   : > { %v1349_v22 = vpop.f32.mrf.mxu0  ;;  %1440 = vmatpush3.bf16.msra.mxu1 %v1537_v39 }
 0x11e   : > { %717 = vst [vmem:[%s1723_s24 + $0x58] sm:$0xff] %v1348_v21  ;;  %v763_v25 = vpack.c.bf16 %v1348_v21, %v1345_v17 }
 0x11f   : > { %v1350_v23 = vpop.f32.mrf.mxu0 }
 0x120   : > { %v1351_v24 = vadd.f32 %v1350_v23, %v1349_v22  ;;  %1418 = vmatmul.mubr.bf16.gmra.mxu1 %v763_v25 }
 0x121   : > { %v1352_v26 = vpop.f32.mrf.mxu0 }
 0x122   : > { %718 = vst [vmem:[%s1723_s24 + $0x60] sm:$0xff] %v1351_v24 }
 0x123   : > { %v1353_v27 = vpop.f32.mrf.mxu0 }
 0x124   : > { %v1354_v28 = vadd.f32 %v1353_v27, %v1352_v26 }
 0x125   : > { %v1355_v29 = vpop.f32.mrf.mxu0 }
 0x126   : > { %719 = vst [vmem:[%s1723_s24 + $0x68] sm:$0xff] %v1354_v28  ;;  %v764_v32 = vpack.c.bf16 %v1354_v28, %v1351_v24 }
 0x127   : > { %v1356_v30 = vpop.f32.mrf.mxu0 }
 0x128   : > { %v1357_v31 = vadd.f32 %v1356_v30, %v1355_v29  ;;  %1421 = vmatprep.mubr.bf16.mxu1 %v764_v32 }
 0x129   : > { %v1358_v33 = vpop.f32.mrf.mxu0 }
 0x12a   : > { %720 = vst [vmem:[%s1723_s24 + $0x70] sm:$0xff] %v1357_v31 }
 0x12b   : > { %v1359_v34 = vpop.f32.mrf.mxu0 }
 0x12c   : > { %v1360_v35 = vadd.f32 %v1359_v34, %v1358_v33  ;;  %v1285_v33 = vld [vmem:[%s1804_s5] ss:$0 sm:$0xff] }
 0x12e   : > { %721 = vst [vmem:[%s1723_s24 + $0x78] sm:$0xff] %v1360_v35  ;;  %v765_v36 = vpack.c.bf16 %v1360_v35, %v1357_v31 }
 0x130   : > { %1422 = vmatmul.mubr.bf16.gmra.mxu1 %v765_v36 }
 0x1c0   : > { %v1411_v40 = vpop.f32.mrf.mxu1 }
 0x1c1   : > { %v863_v46 = vadd.f32 %v1411_v40, %v1276_v42 }
 0x1c2   : > { %v854_v41 = vpop.f32.mrf.mxu1 }
 0x1c3   : > { %v855_v44 = vadd.f32 %v1276_v42, %v854_v41  ;;  %v919_v52 = vmax.f32 %v863_v46, 0.0 }
 0x1c4   : > { %v1412_v43 = vpop.f32.mrf.mxu1 }
 0x1c5   : > { %v866_v45 = vadd.f32 %v1412_v43, %v1276_v42  ;;  %v917_v50 = vmax.f32 %v855_v44, 0.0 }
 0x1c6   : > { %v857_v47 = vpop.f32.mrf.mxu1 }
 0x1c7   : > { %v858_v48 = vadd.f32 %v1276_v42, %v857_v47  ;;  %v920_v49 = vmax.f32 %v866_v45, 0.0 }
 0x1c9   : > { %v918_v51 = vmax.f32 %v858_v48, 0.0  ;;  %v951_v54 = vpack.c.bf16 %v920_v49, %v919_v52 }
 0x1cb   : > { %v950_v53 = vpack.c.bf16 %v918_v51, %v917_v50 }
 0x1cd   : > { %1441 = vmatprep.mubr.bf16.mxu1 %v950_v53 }
 0x1ce   : > { %1442 = vmatmul.mubr.bf16.vlgmr.msra.gmra.mxu1 %v951_v54 }
 0x1d0   : > { %v1415_v55 = vpop.f32.mrf.mxu1 }
 0x1d1   : > { %v879_v60 = vadd.f32 %v1415_v55, %v1276_v42 }
 0x1d2   : > { %v870_v56 = vpop.f32.mrf.mxu1 }
 0x1d3   : > { %v871_v58 = vadd.f32 %v1276_v42, %v870_v56  ;;  %v923_v2 = vmax.f32 %v879_v60, 0.0 }
 0x1d4   : > { %v1416_v57 = vpop.f32.mrf.mxu1 }
 0x1d5   : > { %v882_v59 = vadd.f32 %v1416_v57, %v1276_v42  ;;  %v921_v0 = vmax.f32 %v871_v58, 0.0 }
 0x1d6   : > { %v873_v61 = vpop.f32.mrf.mxu1 }
 0x1d7   : > { %v874_v62 = vadd.f32 %v1276_v42, %v873_v61  ;;  %v924_v63 = vmax.f32 %v882_v59, 0.0 }
 0x1d9   : > { %v922_v1 = vmax.f32 %v874_v62, 0.0  ;;  %v953_v4 = vpack.c.bf16 %v924_v63, %v923_v2 }
 0x1db   : > { %v952_v3 = vpack.c.bf16 %v922_v1, %v921_v0 }
 0x1dd   : > { %1445 = vmatprep.mubr.bf16.mxu1 %v952_v3 }
 0x1de   : > { %1446 = vmatmul.mubr.bf16.gmra.mxu1 %v953_v4 }
 0x1e0   : > { %v1419_v5 = vpop.f32.mrf.mxu1 }
 0x1e1   : > { %v895_v10 = vadd.f32 %v1419_v5, %v1276_v42 }
 0x1e2   : > { %v886_v6 = vpop.f32.mrf.mxu1 }
 0x1e3   : > { %v887_v8 = vadd.f32 %v1276_v42, %v886_v6  ;;  %v927_v16 = vmax.f32 %v895_v10, 0.0 }
 0x1e4   : > { %v1420_v7 = vpop.f32.mrf.mxu1 }
 0x1e5   : > { %v898_v9 = vadd.f32 %v1420_v7, %v1276_v42  ;;  %v925_v14 = vmax.f32 %v887_v8, 0.0 }
 0x1e6   : > { %v889_v11 = vpop.f32.mrf.mxu1 }
 0x1e7   : > { %v890_v12 = vadd.f32 %v1276_v42, %v889_v11  ;;  %v928_v13 = vmax.f32 %v898_v9, 0.0 }
 0x1e9   : > { %v926_v15 = vmax.f32 %v890_v12, 0.0  ;;  %v955_v18 = vpack.c.bf16 %v928_v13, %v927_v16 }
 0x1eb   : > { %v954_v17 = vpack.c.bf16 %v926_v15, %v925_v14 }
 0x1ed   : > { %1449 = vmatprep.mubr.bf16.mxu1 %v954_v17 }
 0x1ee   : > { %1450 = vmatmul.mubr.bf16.gmra.mxu1 %v955_v18 }
 0x1f0   : > { %v1423_v19 = vpop.f32.mrf.mxu1 }
 0x1f1   : > { %v911_v24 = vadd.f32 %v1423_v19, %v1276_v42 }
 0x1f2   : > { %v902_v20 = vpop.f32.mrf.mxu1 }
 0x1f3   : > { %v903_v22 = vadd.f32 %v1276_v42, %v902_v20  ;;  %v931_v30 = vmax.f32 %v911_v24, 0.0 }
 0x1f4   : > { %v1424_v21 = vpop.f32.mrf.mxu1 }
 0x1f5   : > { %v914_v23 = vadd.f32 %v1424_v21, %v1276_v42  ;;  %v929_v28 = vmax.f32 %v903_v22, 0.0 }
 0x1f6   : > { %v905_v25 = vpop.f32.mrf.mxu1 }
 0x1f7   : > { %v906_v26 = vadd.f32 %v1276_v42, %v905_v25  ;;  %v932_v27 = vmax.f32 %v914_v23, 0.0 }
 0x1f9   : > { %v930_v29 = vmax.f32 %v906_v26, 0.0  ;;  %v957_v32 = vpack.c.bf16 %v932_v27, %v931_v30 }
 0x1fb   : > { %v956_v31 = vpack.c.bf16 %v930_v29, %v929_v28 }
 0x1fd   : > { %1453 = vmatprep.mubr.bf16.mxu1 %v956_v31 }
 0x1fe   : > { %1454 = vmatmul.mubr.bf16.gmra.mxu1 %v957_v32 }
 0x28e   : > { %v1443_v34 = vpop.f32.mrf.mxu1 }
 0x28f   : > { %v1055_v35 = vadd.f32 %v1443_v34, %v1285_v33 }
 0x290   : > { %v1046_v36 = vpop.f32.mrf.mxu1 }
 0x291   : > { %1111 = vst [vmem:[%s1772_s29 + $0x10] sm:$0xff] %v1055_v35  ;;  %v1047_v37 = vadd.f32 %v1285_v33, %v1046_v36 }
 0x292   : > { %v1444_v38 = vpop.f32.mrf.mxu1 }
 0x293   : > { %1109 = vst [vmem:[%s1772_s29] sm:$0xff] %v1047_v37  ;;  %v1058_v39 = vadd.f32 %v1444_v38, %v1285_v33 }
 0x294   : > { %v1049_v40 = vpop.f32.mrf.mxu1 }
 0x295   : > { %1112 = vst [vmem:[%s1772_s29 + $0x18] sm:$0xff] %v1058_v39  ;;  %v1050_v41 = vadd.f32 %v1285_v33, %v1049_v40 }
 0x297   : > { %1110 = vst [vmem:[%s1772_s29 + $0x8] sm:$0xff] %v1050_v41 }
 0x29e   : > { %v1447_v42 = vpop.f32.mrf.mxu1 }
 0x29f   : > { %v1071_v43 = vadd.f32 %v1447_v42, %v1285_v33 }
 0x2a0   : > { %v1062_v44 = vpop.f32.mrf.mxu1 }
 0x2a1   : > { %1115 = vst [vmem:[%s1772_s29 + $0x30] sm:$0xff] %v1071_v43  ;;  %v1063_v45 = vadd.f32 %v1285_v33, %v1062_v44 }
 0x2a2   : > { %v1448_v46 = vpop.f32.mrf.mxu1 }
 0x2a3   : > { %1113 = vst [vmem:[%s1772_s29 + $0x20] sm:$0xff] %v1063_v45  ;;  %v1074_v47 = vadd.f32 %v1448_v46, %v1285_v33 }
 0x2a4   : > { %v1065_v48 = vpop.f32.mrf.mxu1 }
 0x2a5   : > { %1116 = vst [vmem:[%s1772_s29 + $0x38] sm:$0xff] %v1074_v47  ;;  %v1066_v49 = vadd.f32 %v1285_v33, %v1065_v48 }
 0x2a7   : > { %1114 = vst [vmem:[%s1772_s29 + $0x28] sm:$0xff] %v1066_v49 }
 0x2ae   : > { %v1451_v50 = vpop.f32.mrf.mxu1 }
 0x2af   : > { %v1087_v51 = vadd.f32 %v1451_v50, %v1285_v33 }
 0x2b0   : > { %v1078_v52 = vpop.f32.mrf.mxu1 }
 0x2b1   : > { %1119 = vst [vmem:[%s1772_s29 + $0x50] sm:$0xff] %v1087_v51  ;;  %v1079_v53 = vadd.f32 %v1285_v33, %v1078_v52 }
 0x2b2   : > { %v1452_v54 = vpop.f32.mrf.mxu1 }
 0x2b3   : > { %1117 = vst [vmem:[%s1772_s29 + $0x40] sm:$0xff] %v1079_v53  ;;  %v1090_v55 = vadd.f32 %v1452_v54, %v1285_v33 }
 0x2b4   : > { %v1081_v56 = vpop.f32.mrf.mxu1 }
 0x2b5   : > { %1120 = vst [vmem:[%s1772_s29 + $0x58] sm:$0xff] %v1090_v55  ;;  %v1082_v57 = vadd.f32 %v1285_v33, %v1081_v56 }
 0x2b7   : > { %1118 = vst [vmem:[%s1772_s29 + $0x48] sm:$0xff] %v1082_v57 }
 0x2be   : > { %v1455_v58 = vpop.f32.mrf.mxu1 }
 0x2bf   : > { %v1103_v59 = vadd.f32 %v1455_v58, %v1285_v33 }
 0x2c0   : > { %v1094_v60 = vpop.f32.mrf.mxu1 }
 0x2c1   : > { %1123 = vst [vmem:[%s1772_s29 + $0x70] sm:$0xff] %v1103_v59  ;;  %v1095_v61 = vadd.f32 %v1285_v33, %v1094_v60 }
 0x2c2   : > { %v1456_v62 = vpop.f32.mrf.mxu1 }
 0x2c3   : > { %1121 = vst [vmem:[%s1772_s29 + $0x60] sm:$0xff] %v1095_v61  ;;  %v1106_v63 = vadd.f32 %v1456_v62, %v1285_v33 }
 0x2c4   : > { %v1097_v0 = vpop.f32.mrf.mxu1 }
 0x2c5   : > { %1124 = vst [vmem:[%s1772_s29 + $0x78] sm:$0xff] %v1106_v63  ;;  %v1098_v1 = vadd.f32 %v1285_v33, %v1097_v0 }
 0x2c7   : > { %1122 = vst [vmem:[%s1772_s29 + $0x68] sm:$0xff] %v1098_v1 }
 0x2c8 PF: > { %s18_s26 = sadd.s32 1, %s1560_s26   ;;  %s1807_s24 = smov %s1556_s25 }
 0x2c9   : > { %p15_p5 = scmp.ge.s32.totalorder %s18_s26, 4   ;;  %s1808_s25 = smov %s1810_s27 }
 0x2cb   :  { %17 = sbr.rel (!%p15_p5) target bundleno = 2 (0x2), region = 95 }

</bundles_post_ra>
